<compile_context>
chip_gen: v7x
topology: tpu7x:2x2x1
jax: 0.10.0
libtpu: 0.0.40
codegen_flags: <defaults>
</compile_context>

<pallas_src>
import functools

import jax
import jax.numpy as jnp
from jax.experimental import pallas as pl
from jax.experimental.pallas import tpu as pltpu


def _round_up(x, m):
    return (x + m - 1) // m * m


def decoder_kernel(z_ref, w0_ref, b0_ref, w1_ref, b1_ref, w2_ref, b2_ref,
                   logit_ref, recon_ref):
    # z tile: (TM, in_ch) f32.  Weights: bf16.  Biases: f32 (1, N).
    z = z_ref[...]

    # fc0 + leaky_relu(0.2)   (MXU bf16 x bf16 -> f32 acc; epilogue f32)
    y = jnp.dot(z.astype(jnp.bfloat16), w0_ref[...],
                preferred_element_type=jnp.float32) + b0_ref[...]
    y = jnp.maximum(y, 0.2 * y)

    # fc1 + leaky_relu(0.2)
    y = jnp.dot(y.astype(jnp.bfloat16), w1_ref[...],
                preferred_element_type=jnp.float32) + b1_ref[...]
    y = jnp.maximum(y, 0.2 * y)

    # fc2 -> logit; sigmoid = 1 / (1 + exp(-logit)) with EUP exp + approx recip.
    logit = jnp.dot(y.astype(jnp.bfloat16), w2_ref[...],
                    preferred_element_type=jnp.float32) + b2_ref[...]
    logit_ref[...] = logit
    recon = pl.reciprocal(1.0 + jnp.exp(-logit), approx=True)
    recon_ref[...] = recon.astype(recon_ref.dtype)


def prepare_params(params_f32, lane=128):
    """Pad hidden_ch up to a multiple of 128 (lane-dense) and cast weights to bf16.

    Zero weight columns/rows and zero bias leave the math exactly unchanged:
    leaky_relu(0) = 0 and the padded rows of w1/w2 are zero.
    """
    w0, b0, w1, b1, w2, b2 = params_f32
    h = w0.shape[1]
    hp = _round_up(h, lane)

    def pad_cols(a, n):
        return jnp.pad(a, ((0, 0), (0, n - a.shape[1])))

    def pad_rows(a, n):
        return jnp.pad(a, ((0, n - a.shape[0]), (0, 0)))

    w0p = pad_cols(w0, hp).astype(jnp.bfloat16)
    b0p = pad_cols(b0, hp)                                   # f32
    w1p = pad_cols(pad_rows(w1, hp), hp).astype(jnp.bfloat16)
    b1p = pad_cols(b1, hp)                                   # f32
    w2p = pad_rows(w2, hp).astype(jnp.bfloat16)
    b2p = b2                                                 # f32
    return (w0p, b0p, w1p, b1p, w2p, b2p)


@functools.partial(jax.jit, static_argnames=("imsize", "tm"))
def decoder_forward(z, prepared_params, imsize, *, tm=2048):
    """z: (B, in_ch) float32.

    Returns (logit, x_recon), shapes (B, 1, imsize, imsize).
    logit is float32; x_recon is bfloat16 (sigmoid in [0,1], ~4e-3 abs error).
    """
    w0, b0, w1, b1, w2, b2 = prepared_params
    B, in_ch = z.shape
    hidden = w0.shape[1]
    out_ch = w2.shape[1]

    # Batch tile: multiple of 8 sublanes, capped at `tm`.  Size it to ~ceil(B/2)
    # so moderate/large batches give a grid >= 2 steps (both v7x TensorCores
    # get work via the "parallel" dimension semantic).
    TM = min(tm, max(8, _round_up(pl.cdiv(B, 2), 8)))
    B_pad = _round_up(B, TM)
    if B_pad != B:
        z = jnp.pad(z, ((0, B_pad - B), (0, 0)))
    grid = (B_pad // TM,)

    const = lambda i: (0, 0)   # weights/biases: VMEM-resident across all steps
    in_specs = [
        pl.BlockSpec((TM, in_ch), lambda i: (i, 0)),     # z tile
        pl.BlockSpec((in_ch, hidden), const),            # w0 (bf16)
        pl.BlockSpec((1, hidden), const),                # b0
        pl.BlockSpec((hidden, hidden), const),           # w1 (bf16)
        pl.BlockSpec((1, hidden), const),                # b1
        pl.BlockSpec((hidden, out_ch), const),           # w2 (bf16)
        pl.BlockSpec((1, out_ch), const),                # b2
    ]
    out_specs = (
        pl.BlockSpec((TM, out_ch), lambda i: (i, 0)),    # logit (f32)
        pl.BlockSpec((TM, out_ch), lambda i: (i, 0)),    # x_recon (bf16)
    )

    # Advisory cost for XLA's scheduler (kernel is HBM-writeback bound).
    weight_bytes = (in_ch * hidden + hidden * hidden + hidden * out_ch) * 2 \
        + (2 * hidden + out_ch) * 4
    cost = pl.CostEstimate(
        flops=2 * B_pad * (in_ch * hidden + hidden * hidden + hidden * out_ch),
        transcendentals=B_pad * out_ch,
        bytes_accessed=B_pad * (in_ch * 4 + out_ch * 4 + out_ch * 2) + weight_bytes,
    )

    logit_flat, recon_flat = pl.pallas_call(
        decoder_kernel,
        out_shape=(
            jax.ShapeDtypeStruct((B_pad, out_ch), jnp.float32),
            jax.ShapeDtypeStruct((B_pad, out_ch), jnp.bfloat16),
        ),
        grid=grid,
        in_specs=in_specs,
        out_specs=out_specs,
        compiler_params=pltpu.CompilerParams(
            dimension_semantics=("parallel",),   # v7x: shard batch tiles across 2 TCs
        ),
        cost_estimate=cost,
    )(z, w0, b0, w1, b1, w2, b2)

    logit = logit_flat[:B].reshape(-1, 1, imsize, imsize)
    x_recon = recon_flat[:B].reshape(-1, 1, imsize, imsize)
    return logit, x_recon


def init_params(key, in_ch, hidden_ch, out_ch):
    """Deterministic synthetic Linear weights, stored (in, out) + (1, out) bias, f32."""
    ks = jax.random.split(key, 6)

    def lin(kw, kb, fan_in, fan_out):
        bound = 1.0 / jnp.sqrt(fan_in)
        w = jax.random.uniform(kw, (fan_in, fan_out), jnp.float32, -bound, bound)
        b = jax.random.uniform(kb, (1, fan_out), jnp.float32, -bound, bound)
        return w, b

    w0, b0 = lin(ks[0], ks[1], in_ch, hidden_ch)
    w1, b1 = lin(ks[2], ks[3], hidden_ch, hidden_ch)
    w2, b2 = lin(ks[4], ks[5], hidden_ch, out_ch)
    return (w0, b0, w1, b1, w2, b2)


def _ref_forward(z, params_f32, imsize):
    """Pure-JAX reference emulating the kernel's bf16 matmul operands (f32 accumulate)."""
    w0, b0, w1, b1, w2, b2 = params_f32
    bf = lambda a: a.astype(jnp.bfloat16).astype(jnp.float32)
    lrelu = lambda x: jnp.where(x >= 0, x, 0.2 * x)
    y = lrelu(bf(z) @ bf(w0) + b0)
    y = lrelu(bf(y) @ bf(w1) + b1)
    logit = (bf(y) @ bf(w2) + b2).reshape(-1, 1, imsize, imsize)
    return logit, jax.nn.sigmoid(logit)


if __name__ == "__main__":
    # cfg: in_ch=8, hidden_ch=32, out_ch=256 -> imsize = 16
    B, in_ch, hidden_ch, out_ch = 2, 8, 32, 256
    imsize = int(out_ch ** 0.5)

    key = jax.random.PRNGKey(0)
    kz, kp = jax.random.split(key)
    z = jax.random.normal(kz, (B, in_ch), jnp.float32)
    params_f32 = init_params(kp, in_ch, hidden_ch, out_ch)
    prepared = prepare_params(params_f32)

    logit, x_recon = decoder_forward(z, prepared, imsize)
    jax.block_until_ready((logit, x_recon))

    # Correctness check against pure-JAX reference.
    logit_ref, recon_ref = _ref_forward(z, params_f32, imsize)
    assert logit.shape == (B, 1, imsize, imsize)
    assert x_recon.shape == (B, 1, imsize, imsize)
    assert logit.dtype == jnp.float32
    assert jnp.allclose(logit, logit_ref, atol=2e-3, rtol=2e-3), "logit mismatch"
    # x_recon is bf16 (sigmoid in [0,1]) + approx reciprocal: ~1e-2 tolerance.
    assert jnp.allclose(x_recon.astype(jnp.float32), recon_ref, atol=1.5e-2), "recon mismatch"

    print("KERNEL_OK")
</pallas_src>

<mosaic_0001>
module attributes {stable_mosaic.version = 11 : i64} {
  func.func @decoder_kernel(%arg0: i32, %arg1: memref<8x8xf32, #tpu.memory_space<vmem>>, %arg2: memref<8x128xbf16, #tpu.memory_space<vmem>>, %arg3: memref<1x128xf32, #tpu.memory_space<vmem>>, %arg4: memref<128x128xbf16, #tpu.memory_space<vmem>>, %arg5: memref<1x128xf32, #tpu.memory_space<vmem>>, %arg6: memref<128x256xbf16, #tpu.memory_space<vmem>>, %arg7: memref<1x256xf32, #tpu.memory_space<vmem>>, %arg8: memref<8x256xf32, #tpu.memory_space<vmem>>, %arg9: memref<8x256xbf16, #tpu.memory_space<vmem>>) attributes {dimension_semantics = [#tpu.dimension_semantics<parallel>], iteration_bounds = array<i64: 1>, scalar_prefetch = 0 : i64, scratch_operands = 0 : i64, tpu.core_type = #tpu.core_type<tc>, window_params = [{transform_indices = @transform_0, window_bounds = array<i64: 8, 8>}, {pipeline_mode = #tpu.pipeline_mode<synchronous>, transform_indices = @transform_1, window_bounds = array<i64: 8, 128>}, {pipeline_mode = #tpu.pipeline_mode<synchronous>, transform_indices = @transform_2, window_bounds = array<i64: 1, 128>}, {pipeline_mode = #tpu.pipeline_mode<synchronous>, transform_indices = @transform_3, window_bounds = array<i64: 128, 128>}, {pipeline_mode = #tpu.pipeline_mode<synchronous>, transform_indices = @transform_4, window_bounds = array<i64: 1, 128>}, {pipeline_mode = #tpu.pipeline_mode<synchronous>, transform_indices = @transform_5, window_bounds = array<i64: 128, 256>}, {pipeline_mode = #tpu.pipeline_mode<synchronous>, transform_indices = @transform_6, window_bounds = array<i64: 1, 256>}, {transform_indices = @transform_7, window_bounds = array<i64: 8, 256>}, {transform_indices = @transform_8, window_bounds = array<i64: 8, 256>}]} {
    %c0 = arith.constant 0 : index
    %c0_0 = arith.constant 0 : index
    %0 = vector.load %arg1[%c0, %c0_0] : memref<8x8xf32, #tpu.memory_space<vmem>>, vector<8x8xf32>
    %1 = arith.truncf %0 : vector<8x8xf32> to vector<8x8xbf16>
    %c0_1 = arith.constant 0 : index
    %c0_2 = arith.constant 0 : index
    %2 = vector.load %arg2[%c0_1, %c0_2] : memref<8x128xbf16, #tpu.memory_space<vmem>>, vector<8x128xbf16>
    %cst = arith.constant dense<0.000000e+00> : vector<8x128xf32>
    %3 = tpu.matmul %1, %2, %cst {dimension_numbers = #tpu.dot_dimension_numbers<[1], [0], [0], [1], [0, 0, 1, 1], [], []>} : vector<8x8xbf16>, vector<8x128xbf16>, vector<8x128xf32> -> vector<8x128xf32>
    %c0_3 = arith.constant 0 : index
    %c0_4 = arith.constant 0 : index
    %4 = vector.load %arg3[%c0_3, %c0_4] : memref<1x128xf32, #tpu.memory_space<vmem>>, vector<1x128xf32>
    %5 = vector.broadcast %4 : vector<1x128xf32> to vector<8x128xf32>
    %6 = arith.addf %3, %5 : vector<8x128xf32>
    %cst_5 = arith.constant 2.000000e-01 : f32
    %7 = vector.broadcast %cst_5 : f32 to vector<8x128xf32>
    %8 = arith.mulf %7, %6 : vector<8x128xf32>
    %9 = arith.maximumf %6, %8 : vector<8x128xf32>
    %10 = arith.truncf %9 : vector<8x128xf32> to vector<8x128xbf16>
    %c0_6 = arith.constant 0 : index
    %c0_7 = arith.constant 0 : index
    %11 = vector.load %arg4[%c0_6, %c0_7] : memref<128x128xbf16, #tpu.memory_space<vmem>>, vector<128x128xbf16>
    %cst_8 = arith.constant dense<0.000000e+00> : vector<8x128xf32>
    %12 = tpu.matmul %10, %11, %cst_8 {dimension_numbers = #tpu.dot_dimension_numbers<[1], [0], [0], [1], [0, 0, 1, 1], [], []>} : vector<8x128xbf16>, vector<128x128xbf16>, vector<8x128xf32> -> vector<8x128xf32>
    %c0_9 = arith.constant 0 : index
    %c0_10 = arith.constant 0 : index
    %13 = vector.load %arg5[%c0_9, %c0_10] : memref<1x128xf32, #tpu.memory_space<vmem>>, vector<1x128xf32>
    %14 = vector.broadcast %13 : vector<1x128xf32> to vector<8x128xf32>
    %15 = arith.addf %12, %14 : vector<8x128xf32>
    %cst_11 = arith.constant 2.000000e-01 : f32
    %16 = vector.broadcast %cst_11 : f32 to vector<8x128xf32>
    %17 = arith.mulf %16, %15 : vector<8x128xf32>
    %18 = arith.maximumf %15, %17 : vector<8x128xf32>
    %19 = arith.truncf %18 : vector<8x128xf32> to vector<8x128xbf16>
    %c0_12 = arith.constant 0 : index
    %c0_13 = arith.constant 0 : index
    %20 = vector.load %arg6[%c0_12, %c0_13] : memref<128x256xbf16, #tpu.memory_space<vmem>>, vector<128x256xbf16>
    %cst_14 = arith.constant dense<0.000000e+00> : vector<8x256xf32>
    %21 = tpu.matmul %19, %20, %cst_14 {dimension_numbers = #tpu.dot_dimension_numbers<[1], [0], [0], [1], [0, 0, 1, 1], [], []>} : vector<8x128xbf16>, vector<128x256xbf16>, vector<8x256xf32> -> vector<8x256xf32>
    %c0_15 = arith.constant 0 : index
    %c0_16 = arith.constant 0 : index
    %22 = vector.load %arg7[%c0_15, %c0_16] : memref<1x256xf32, #tpu.memory_space<vmem>>, vector<1x256xf32>
    %23 = vector.broadcast %22 : vector<1x256xf32> to vector<8x256xf32>
    %24 = arith.addf %21, %23 : vector<8x256xf32>
    %c0_17 = arith.constant 0 : index
    %c0_18 = arith.constant 0 : index
    %25 = vector.load %arg8[%c0_17, %c0_18] : memref<8x256xf32, #tpu.memory_space<vmem>>, vector<8x256xf32>
    tpu.vector_store %arg8[%c0_17, %c0_18], %24 {strides = array<i32>} : memref<8x256xf32, #tpu.memory_space<vmem>>, vector<8x256xf32>,
    %cst_19 = arith.constant 0.000000e+00 : f32
    %26 = vector.broadcast %cst_19 : f32 to vector<8x256xf32>
    %27 = arith.subf %26, %24 : vector<8x256xf32>
    %28 = math.exp %27 : vector<8x256xf32>
    %cst_20 = arith.constant 1.000000e+00 : f32
    %29 = vector.broadcast %cst_20 : f32 to vector<8x256xf32>
    %30 = arith.addf %29, %28 : vector<8x256xf32>
    %31 = tpu.reciprocal %30 {approx = true} : vector<8x256xf32> -> vector<8x256xf32>
    %32 = arith.truncf %31 : vector<8x256xf32> to vector<8x256xbf16>
    %c0_21 = arith.constant 0 : index
    %c0_22 = arith.constant 0 : index
    %33 = vector.load %arg9[%c0_21, %c0_22] : memref<8x256xbf16, #tpu.memory_space<vmem>>, vector<8x256xbf16>
    tpu.vector_store %arg9[%c0_21, %c0_22], %32 {strides = array<i32>} : memref<8x256xbf16, #tpu.memory_space<vmem>>, vector<8x256xbf16>,
    return
  }
  func.func @transform_0(%arg0: i32) -> (i32, i32) {
    %c0_i32 = arith.constant 0 : i32
    %c0_i32_0 = arith.constant 0 : i32
    return %arg0, %c0_i32 : i32, i32
  }
  func.func @transform_1(%arg0: i32) -> (i32, i32) {
    %c0_i32 = arith.constant 0 : i32
    %c0_i32_0 = arith.constant 0 : i32
    %c0_i32_1 = arith.constant 0 : i32
    return %c0_i32, %c0_i32_0 : i32, i32
  }
  func.func @transform_2(%arg0: i32) -> (i32, i32) {
    %c0_i32 = arith.constant 0 : i32
    %c0_i32_0 = arith.constant 0 : i32
    %c0_i32_1 = arith.constant 0 : i32
    return %c0_i32, %c0_i32_0 : i32, i32
  }
  func.func @transform_3(%arg0: i32) -> (i32, i32) {
    %c0_i32 = arith.constant 0 : i32
    %c0_i32_0 = arith.constant 0 : i32
    %c0_i32_1 = arith.constant 0 : i32
    return %c0_i32, %c0_i32_0 : i32, i32
  }
  func.func @transform_4(%arg0: i32) -> (i32, i32) {
    %c0_i32 = arith.constant 0 : i32
    %c0_i32_0 = arith.constant 0 : i32
    %c0_i32_1 = arith.constant 0 : i32
    return %c0_i32, %c0_i32_0 : i32, i32
  }
  func.func @transform_5(%arg0: i32) -> (i32, i32) {
    %c0_i32 = arith.constant 0 : i32
    %c0_i32_0 = arith.constant 0 : i32
    %c0_i32_1 = arith.constant 0 : i32
    return %c0_i32, %c0_i32_0 : i32, i32
  }
  func.func @transform_6(%arg0: i32) -> (i32, i32) {
    %c0_i32 = arith.constant 0 : i32
    %c0_i32_0 = arith.constant 0 : i32
    %c0_i32_1 = arith.constant 0 : i32
    return %c0_i32, %c0_i32_0 : i32, i32
  }
  func.func @transform_7(%arg0: i32) -> (i32, i32) {
    %c0_i32 = arith.constant 0 : i32
    %c0_i32_0 = arith.constant 0 : i32
    return %arg0, %c0_i32 : i32, i32
  }
  func.func @transform_8(%arg0: i32) -> (i32, i32) {
    %c0_i32 = arith.constant 0 : i32
    %c0_i32_0 = arith.constant 0 : i32
    return %arg0, %c0_i32 : i32, i32
  }
}

</mosaic_0001>

<bundles_post_ra>
// kernel: decoder_forward.1
= control target key start
LH: loop header
LB: loop body
LE: loop exit
PB: predicated region body
PF: predicated region fallthrough
CT: control target
= control target key end

     0   :  { %14 = vsyncpa [#allocation3], 0  ;;  %s677_s0 = inlined_call_operand.vmem [shape: f32[8,8], index: 0, kind: input, shape index: {}]   ;;  %s678_s1 = inlined_call_operand.vmem [shape: bf16[8,128], index: 1, kind: input, shape index: {}]   ;;  %s679_s2 = inlined_call_operand.vmem [shape: f32[1,128], index: 2, kind: input, shape index: {}]   ;;  %s680_s3 = inlined_call_operand.hbm [shape: bf16[128,128], index: 3, kind: input, shape index: {}]   ;;  %s681_s4 = inlined_call_operand.vmem [shape: f32[1,128], index: 4, kind: input, shape index: {}]   ;;  %s682_s5 = inlined_call_operand.hbm [shape: bf16[128,256], index: 5, kind: input, shape index: {}]   ;;  %s683_s6 = inlined_call_operand.vmem [shape: f32[1,256], index: 6, kind: input, shape index: {}]   ;;  %s684_s7 = inlined_call_operand.vmem [shape: f32[8,256], index: 7, kind: output, shape index: {0}]   ;;  %s685_s8 = inlined_call_operand.vmem [shape: bf16[8,256], index: 8, kind: output, shape index: {1}]  }
   0x1   :  { %15 = vsyncpa [#allocation5], 0  ;;  %s575_s27 = smov [#allocation2]   ;;  %s527_s9 = scalar_lea.hbm %s680_s3, 1024 }
   0x2   :  { %s27_s28 = sshll.u32 %s575_s27, 4  ;;  %p528_p0 = scmp.ne.s32.totalorder %s680_s3, %s527_s9  ;;  %s28_s28 = int_to_ptr.vmem [resolvable:$true] %s27_s28 }
   0x3   :  { %p531_p1 = scmp.lt.u32.totalorder %s527_s9, %s680_s3 }
   0x5   :  { %p533_p2 = pnand %p531_p1, %p528_p0 }
   0x7   :  { %536 = shalt.err (!%p533_p2)
}
   0x8   :  { %s537_s14 = scalar_lea.vmem %s28_s28, 1024  ;;  %p542_p4 = scmp.lt.s32.totalorder %s28_s28, %s28_s28 }
   0x9   :  { %p538_p3 = scmp.ne.s32.totalorder %s28_s28, %s537_s14  ;;  %p543_p5 = scmp.lt.s32.totalorder %s537_s14, %s537_s14 }
   0xb   :  { %p544_p6 = por %p543_p5, %p542_p4 }
   0xd   :  { %p545_p7 = pnand %p544_p6, %p538_p3 }
   0xf   :  { %548 = shalt.err (!%p545_p7)
}
  0x10   :  { %s576_s15 = smov 64   ;;  %s577_s16 = smov 4  }
  0x11   :  { %33 = dma.hbm_to_vmem [thread:$0]  %s680_s3, 1024, %s28_s28, [#allocation3], %s576_s15, %s576_s15, %s577_s16  }
  0x12   :  { %s578_s19 = smov [#allocation4]   ;;  %s549_s23 = scalar_lea.hbm %s682_s5, 2048 }
  0x13   :  { %s41_s20 = sshll.u32 %s578_s19, 4  ;;  %p550_p8 = scmp.ne.s32.totalorder %s682_s5, %s549_s23  ;;  %s42_s20 = int_to_ptr.vmem [resolvable:$true] %s41_s20 }
  0x14   :  { %p553_p9 = scmp.lt.u32.totalorder %s549_s23, %s682_s5 }
  0x16   :  { %p555_p10 = pnand %p553_p9, %p550_p8 }
  0x18   :  { %558 = shalt.err (!%p555_p10)
}
  0x19   :  { %s559_s29 = scalar_lea.vmem %s42_s20, 2048  ;;  %p564_p12 = scmp.lt.s32.totalorder %s42_s20, %s42_s20 }
  0x1a   :  { %p560_p11 = scmp.ne.s32.totalorder %s42_s20, %s559_s29  ;;  %p565_p13 = scmp.lt.s32.totalorder %s559_s29, %s559_s29 }
  0x1c   :  { %p566_p0 = por %p565_p13, %p564_p12 }
  0x1e   :  { %p567_p1 = pnand %p566_p0, %p560_p11 }
  0x20   :  { %570 = shalt.err (!%p567_p1)
}
  0x21   :  { %s579_s3 = smov 128   ;;  %s580_s28 = smov 8  }
  0x22   :  { %47 = dma.hbm_to_vmem [thread:$0]  %s682_s5, 2048, %s42_s20, [#allocation5], %s579_s3, %s579_s3, %s580_s28  }
  0x23   :  { %571 = dma.done.wait [#allocation3], 1024  }
  0x24   :  { %572 = vsyncadd [#allocation3], 4294966272 }
  0x25   :  { %573 = dma.done.wait [#allocation5], 2048  }
  0x26   :  { %574 = vsyncadd [#allocation5], 4294965248  ;;  %v581_v0 = vmov 0.0   ;;  %vm582_vm0 = vmmov 0   ;;  %vm71_vm1 = vcmask 1043456   ;;  %v57_v2 = vld [vmem:[%s677_s0] sm:$0xff]  ;;  %v250_v48 = vlaneseq }
  0x27   :  { %452 = vmatprep.subr.bf16.mxu0 %v581_v0  ;;  %454 = vmatprep.mubr.msk.bf16.mxu0 %vm582_vm0, %v581_v0  ;;  %v59_v1 = vld [vmem:[%s678_s1] sm:$0xf]  ;;  %v58_v4 = vpack.c.bf16 %v57_v2, %v57_v2  ;;  %vm67_vm2 = vcmask 64512   ;;  %v488_v6 = vld [vmem:[#allocation2 + $0x8] sm:$0xff]   ;;  %v489_v7 = vld [vmem:[#allocation2 + $0x10] sm:$0xff]   ;;  %v583_v38 = vmov 0  }
  0x28   :  { %458 = vmatprep.subr.bf16.mxu1 %v581_v0  ;;  %474 = vmatprep.mubr.msk.bf16.mxu1 %vm582_vm0, %v581_v0  ;;  %v73_v3 = vsel %vm71_vm1, %v59_v1, 0  ;;  %v487_v5 = vld [vmem:[#allocation2] sm:$0xff]   ;;  %v490_v8 = vld [vmem:[#allocation2 + $0x18] sm:$0xff]   ;;  %v492_v10 = vld [vmem:[#allocation2 + $0x28] sm:$0xff]   ;;  %v251_v49 = vshrl.u32 %v250_v48, 7 }
  0x29   :  { %453 = vmatpush3.bf16.msra.mxu0 %v73_v3  ;;  %459 = vmatpush3.bf16.msra.mxu1 %v487_v5  ;;  %v491_v9 = vld [vmem:[#allocation2 + $0x20] sm:$0xff]   ;;  %v493_v11 = vld [vmem:[#allocation2 + $0x30] sm:$0xff]   ;;  %v494_v12 = vld [vmem:[#allocation2 + $0x38] sm:$0xff]  }
  0x2a   :  { %460 = vmatprep.subr.bf16.mxu1 %v581_v0  ;;  %v495_v13 = vld [vmem:[#allocation4] ss:$8 sps:$4 sm:$0xff]   ;;  %v497_v14 = vld [vmem:[#allocation4 + $0x4] ss:$8 sps:$4 sm:$0xff]   ;;  %v500_v15 = vld [vmem:[#allocation4 + $0x14] ss:$8 sps:$4 sm:$0xff]  }
  0x2b   :  { %340 = vmatprep.subr.bf16.mxu0 %v497_v14  ;;  %v498_v16 = vld [vmem:[#allocation4 + $0x10] ss:$8 sps:$4 sm:$0xff]   ;;  %v503_v17 = vld [vmem:[#allocation4 + $0x24] ss:$8 sps:$4 sm:$0xff]   ;;  %v501_v18 = vld [vmem:[#allocation4 + $0x20] ss:$8 sps:$4 sm:$0xff]  }
  0x2c   :  { %455 = vmatmul.mubr.msk.bf16.vlgmr.msra.gmra.mrb[0].mxu0 %vm67_vm2, %v58_v4  ;;  %v506_v19 = vld [vmem:[#allocation4 + $0x34] ss:$8 sps:$4 sm:$0xff]   ;;  %v504_v20 = vld [vmem:[#allocation4 + $0x30] ss:$8 sps:$4 sm:$0xff]   ;;  %v509_v21 = vld [vmem:[#allocation4 + $0x44] ss:$8 sps:$4 sm:$0xff]  }
  0x2d   :  { %461 = vmatpush3.bf16.msra.mxu1 %v488_v6  ;;  %341 = vmatpush1.bf16.msra.mxu0 %v495_v13  ;;  %v507_v22 = vld [vmem:[#allocation4 + $0x40] ss:$8 sps:$4 sm:$0xff]   ;;  %v512_v23 = vld [vmem:[#allocation4 + $0x54] ss:$8 sps:$4 sm:$0xff]   ;;  %v510_v24 = vld [vmem:[#allocation4 + $0x50] ss:$8 sps:$4 sm:$0xff]  }
  0x2e   :  { %462 = vmatprep.subr.bf16.mxu1 %v581_v0  ;;  %342 = vmatprep.subr.bf16.mxu0 %v500_v15  ;;  %v412_v25 = vld [vmem:[%s679_s2] ss:$0 sm:$0xff]  ;;  %v515_v34 = vld [vmem:[#allocation4 + $0x64] ss:$8 sps:$4 sm:$0xff]   ;;  %v518_v36 = vld [vmem:[#allocation4 + $0x74] ss:$8 sps:$4 sm:$0xff]  }
  0x2f   :  { %v513_v35 = vld [vmem:[#allocation4 + $0x60] ss:$8 sps:$4 sm:$0xff]   ;;  %v516_v37 = vld [vmem:[#allocation4 + $0x70] ss:$8 sps:$4 sm:$0xff]   ;;  %372 = vmatprep.mubr.bf16.mxu0 %v583_v38  ;;  %v252_v50 = vsub.s32 0, %v251_v49  ;;  %v256_v52 = vsub.s32 1, %v251_v49 }
  0x30   :  { %v414_v39 = vld [vmem:[%s681_s4] ss:$0 sm:$0xff] }
  0x31   :  { %463 = vmatpush3.bf16.msra.mxu1 %v489_v7  ;;  %343 = vmatpush1.bf16.msra.mxu0 %v498_v16  ;;  %v248_v51 = vld [vmem:[%s683_s6] sm:$0x3] }
  0x32   :  { %464 = vmatprep.subr.bf16.mxu1 %v581_v0  ;;  %344 = vmatprep.subr.bf16.mxu0 %v503_v17  ;;  %v253_v53 = vrot.slane %v248_v51, %v252_v50  ;;  %v257_v54 = vrot.slane %v248_v51, %v256_v52 }
  0x35   :  { %465 = vmatpush3.bf16.msra.mxu1 %v490_v8  ;;  %345 = vmatpush1.bf16.msra.mxu0 %v501_v18 }
  0x36   :  { %466 = vmatprep.subr.bf16.mxu1 %v581_v0  ;;  %346 = vmatprep.subr.bf16.mxu0 %v506_v19 }
  0x39   :  { %467 = vmatpush3.bf16.msra.mxu1 %v491_v9  ;;  %347 = vmatpush1.bf16.msra.mxu0 %v504_v20 }
  0x3a   :  { %468 = vmatprep.subr.bf16.mxu1 %v581_v0  ;;  %348 = vmatprep.subr.bf16.mxu0 %v509_v21 }
  0x3d   :  { %469 = vmatpush3.bf16.msra.mxu1 %v492_v10  ;;  %349 = vmatpush1.bf16.msra.mxu0 %v507_v22 }
  0x3e   :  { %470 = vmatprep.subr.bf16.mxu1 %v581_v0  ;;  %350 = vmatprep.subr.bf16.mxu0 %v512_v23 }
  0x41   :  { %471 = vmatpush3.bf16.msra.mxu1 %v493_v11  ;;  %351 = vmatpush1.bf16.msra.mxu0 %v510_v24 }
  0x42   :  { %472 = vmatprep.subr.bf16.mxu1 %v581_v0  ;;  %352 = vmatprep.subr.bf16.mxu0 %v515_v34 }
  0x45   :  { %473 = vmatpush3.bf16.msra.mxu1 %v494_v12  ;;  %353 = vmatpush1.bf16.msra.mxu0 %v513_v35 }
  0x46   :  { %354 = vmatprep.subr.bf16.mxu0 %v518_v36 }
  0x49   :  { %355 = vmatpush1.bf16.msra.mxu0 %v516_v37 }
  0xff   :  { %v109_v26 = vpop.f32.mrb[0].mxu0 }
 0x100   :  { %v110_v27 = vadd.f32 %v412_v25, %v109_v26  ;;  %v456_v28 = vpop.f32.mrb[1].mxu0 }
 0x101   :  { %v112_v29 = vpop.f32.mrb[2].mxu0 }
 0x102   :  { %v115_v30 = vmul.f32 0.2, %v110_v27  ;;  %v457_v31 = vpop.f32.mrb[3].mxu0 }
 0x104   :  { %v116_v32 = vmax.f32 %v110_v27, %v115_v30 }
 0x106   :  { %v117_v33 = vpack.c.bf16 %v116_v32, %v116_v32 }
 0x108   :  { %475 = vmatmul.mubr.bf16.vlgmr.msra.gmra.mrb[0].mxu1 %v117_v33 }
 0x1db   :  { %v223_v40 = vpop.f32.mrb[0].mxu1 }
 0x1dc   :  { %v224_v41 = vadd.f32 %v414_v39, %v223_v40  ;;  %v476_v42 = vpop.f32.mrb[1].mxu1 }
 0x1dd   :  { %v226_v43 = vpop.f32.mrb[2].mxu1 }
 0x1de   :  { %v229_v44 = vmul.f32 0.2, %v224_v41  ;;  %v477_v45 = vpop.f32.mrb[3].mxu1 }
 0x1e0   :  { %v230_v46 = vmax.f32 %v224_v41, %v229_v44 }
 0x1e2   :  { %v231_v47 = vpack.c.bf16 %v230_v46, %v230_v46 }
 0x1e4   :  { %373 = vmatmul.mubr.bf16.vlgmr.msra.gmra.mrb[4].mxu0 %v231_v47 }
 0x2b7   :  { %v374_v55 = vpop.f32.mrb[4].mxu0 }
 0x2b8   :  { %v375_v56 = vadd.f32 %v374_v55, %v253_v53  ;;  %v376_v57 = vpop.f32.mrb[5].mxu0 }
 0x2b9   :  { %v377_v58 = vadd.f32 %v376_v57, %v257_v54  ;;  %v378_v59 = vpop.f32.mrb[6].mxu0 }
 0x2ba   :  { %381 = vst [vmem:[%s684_s7] sm:$0xff] %v375_v56  ;;  %v383_v60 = vsub.f32 0.0, %v375_v56  ;;  %v379_v61 = vpop.f32.mrb[7].mxu0 }
 0x2bb   :  { %382 = vst [vmem:[%s684_s7 + $0x8] sm:$0xff] %v377_v58  ;;  %v384_v62 = vsub.f32 0.0, %v377_v58 }
 0x2bc   :  { %v385_v63 = vmul.f32 1.442695, %v383_v60 }
 0x2bd   :  { %v387_v0 = vmul.f32 1.442695, %v384_v62 }
 0x2be   :  { %519 = vpow2.f32 %v385_v63 }
 0x2bf   :  { %521 = vpow2.f32 %v387_v0 }
 0x2c8   :  { %v520_v1 = vpop.eup %519 }
 0x2c9   :  { %v522_v2 = vpop.eup %521  ;;  %v389_v3 = vadd.f32 1.0, %v520_v1 }
 0x2ca   :  { %v390_v4 = vadd.f32 1.0, %v522_v2 }
 0x2cb   :  { %523 = vrcp.f32 %v389_v3 }
 0x2cc   :  { %525 = vrcp.f32 %v390_v4 }
 0x2d5   :  { %v524_v5 = vpop.eup %523 }
 0x2d6   :  { %v526_v6 = vpop.eup %525 }
 0x2d7   :  { %v440_v7 = vpack.c.bf16 %v526_v6, %v524_v5 }
 0x2d9   :  { %401 = vst [vmem:[%s685_s8] sm:$0xff] %v440_v7 }
 0x2da   :  { %410 = vsyncpa [#allocation3], 1 }
 0x2db   :  { %411 = vsyncpa [#allocation5], 1 }

</bundles_post_ra>
